<compile_context>
chip_gen: v7x
topology: tpu7x:2x2x1
jax: 0.10.0
libtpu: 0.0.40
codegen_flags: <defaults>
</compile_context>

<pallas_src>
import functools

import jax
import jax.numpy as jnp
from jax.experimental import pallas as pl
from jax.experimental.pallas import tpu as pltpu

LANE = 128
SUBLANE = 8


def _round_up(n, m):
    return ((n + m - 1) // m) * m


def actor_kernel(x_ref, w1_ref, b1_ref, w2_ref, b2_ref, w3_ref, b3_ref, o_ref,
                 *, max_action):
    # Read biases once as (1, N) f32 values (broadcast on the add, no
    # materialized broadcast_to).
    b1 = b1_ref[...]
    b2 = b2_ref[...]
    b3 = b3_ref[...]

    # Layer 1: (TB, S_pad) @ (S_pad, 512) -> f32 acc, bias+relu in f32.
    x = x_ref[...].astype(jnp.bfloat16)
    h1 = jnp.dot(x, w1_ref[...], preferred_element_type=jnp.float32)
    h1 = jnp.maximum(h1 + b1, 0.0)

    # Layer 2: (TB, 512) @ (512, 384)
    h2 = jnp.dot(h1.astype(jnp.bfloat16), w2_ref[...],
                 preferred_element_type=jnp.float32)
    h2 = jnp.maximum(h2 + b2, 0.0)

    # Layer 3: (TB, 384) @ (384, A_pad), tanh on the EUP, single scalar scale.
    h3 = jnp.dot(h2.astype(jnp.bfloat16), w3_ref[...],
                 preferred_element_type=jnp.float32)
    o_ref[...] = (max_action * jnp.tanh(h3 + b3)).astype(o_ref.dtype)


def actor_forward(x, padded_params, max_action, *, action_dim, batch_tile=256):
    """x: (B, state_dim) f32.  padded_params: output of pad_and_cast_params."""
    w1, b1 = padded_params["w1"], padded_params["b1"]
    w2, b2 = padded_params["w2"], padded_params["b2"]
    w3, b3 = padded_params["w3"], padded_params["b3"]

    B, S = x.shape
    S_pad, H1 = w1.shape
    H2 = w2.shape[1]
    A_pad = w3.shape[1]

    # Batch tile: multiple of the 8-sublane granularity, capped at batch_tile.
    TB = min(batch_tile, _round_up(B, SUBLANE))
    B_pad = _round_up(B, TB)

    # Lane-dense, zero-padded input slab (zeros in padded rows/cols are inert).
    x_pad = jnp.zeros((B_pad, S_pad), jnp.float32).at[:B, :S].set(x)

    grid = (B_pad // TB,)

    flops = 2 * B_pad * (S_pad * H1 + H1 * H2 + H2 * A_pad)
    bytes_accessed = (x_pad.size * 4
                      + (w1.size + w2.size + w3.size) * 2
                      + (b1.size + b2.size + b3.size) * 4
                      + B_pad * A_pad * 4)
    cost = pl.CostEstimate(flops=flops,
                           transcendentals=B_pad * A_pad,
                           bytes_accessed=bytes_accessed)

    kernel = functools.partial(actor_kernel, max_action=float(max_action))
    out = pl.pallas_call(
        kernel,
        out_shape=jax.ShapeDtypeStruct((B_pad, A_pad), jnp.float32),
        grid=grid,
        in_specs=[
            pl.BlockSpec((TB, S_pad), lambda i: (i, 0)),    # x tile (pipelined)
            pl.BlockSpec((S_pad, H1), lambda i: (0, 0)),    # W1 (resident)
            pl.BlockSpec((1, H1),     lambda i: (0, 0)),    # b1
            pl.BlockSpec((H1, H2),    lambda i: (0, 0)),    # W2
            pl.BlockSpec((1, H2),     lambda i: (0, 0)),    # b2
            pl.BlockSpec((H2, A_pad), lambda i: (0, 0)),    # W3
            pl.BlockSpec((1, A_pad),  lambda i: (0, 0)),    # b3
        ],
        out_specs=pl.BlockSpec((TB, A_pad), lambda i: (i, 0)),
        compiler_params=pltpu.CompilerParams(
            dimension_semantics=("parallel",)),
        cost_estimate=cost,
    )(x_pad, w1, b1, w2, b2, w3, b3)

    return out[:B, :action_dim]


def init_actor_params(key, state_dim, action_dim):
    """Unpadded f32 reference parameters (PyTorch-style uniform fan-in init).
    Weights stored as (in_features, out_features), biases as (1, out_features)."""
    def layer(k, fan_in, fan_out):
        kw, kb = jax.random.split(k)
        bound = 1.0 / jnp.sqrt(fan_in)
        w = jax.random.uniform(kw, (fan_in, fan_out), jnp.float32, -bound, bound)
        b = jax.random.uniform(kb, (1, fan_out), jnp.float32, -bound, bound)
        return w, b

    k1, k2, k3 = jax.random.split(key, 3)
    w1, b1 = layer(k1, state_dim, 400)
    w2, b2 = layer(k2, 400, 300)
    w3, b3 = layer(k3, 300, action_dim)
    return {"w1": w1, "b1": b1, "w2": w2, "b2": b2, "w3": w3, "b3": b3}


def pad_and_cast_params(params, weight_dtype=jnp.bfloat16):
    """Zero-pad every dim to a multiple of 128; weights -> bf16, biases -> f32."""
    def pad_w(w):
        fi, fo = w.shape
        out = jnp.zeros((_round_up(fi, LANE), _round_up(fo, LANE)), weight_dtype)
        return out.at[:fi, :fo].set(w.astype(weight_dtype))

    def pad_b(b):
        fo = b.shape[-1]
        out = jnp.zeros((1, _round_up(fo, LANE)), jnp.float32)
        return out.at[:, :fo].set(b.reshape(1, fo).astype(jnp.float32))

    return {
        "w1": pad_w(params["w1"]), "b1": pad_b(params["b1"]),
        "w2": pad_w(params["w2"]), "b2": pad_b(params["b2"]),
        "w3": pad_w(params["w3"]), "b3": pad_b(params["b3"]),
    }


def actor_reference(x, params, max_action):
    h1 = jnp.maximum(x @ params["w1"] + params["b1"], 0.0)
    h2 = jnp.maximum(h1 @ params["w2"] + params["b2"], 0.0)
    return max_action * jnp.tanh(h2 @ params["w3"] + params["b3"])


if __name__ == "__main__":
    state_dim = 8
    action_dim = 4
    max_action = 2.0
    batch = 2

    key = jax.random.PRNGKey(0)
    k_params, k_x = jax.random.split(key)
    params = init_actor_params(k_params, state_dim, action_dim)
    padded_params = pad_and_cast_params(params)
    x = jax.random.normal(k_x, (batch, state_dim), jnp.float32)

    out = actor_forward(x, padded_params, max_action, action_dim=action_dim)
    out = jax.block_until_ready(out)

    ref = actor_reference(x, params, max_action)
    assert out.shape == (batch, action_dim), out.shape
    # bf16 weights/activation-casts for the MXU -> relaxed tolerance vs f32 ref.
    assert jnp.allclose(out, ref, atol=3e-2, rtol=3e-2), (out, ref)

    print("KERNEL_OK")
</pallas_src>

<mosaic_0001>
module attributes {stable_mosaic.version = 11 : i64} {
  func.func @actor_kernel(%arg0: i32, %arg1: memref<8x128xf32, #tpu.memory_space<vmem>>, %arg2: memref<128x512xbf16, #tpu.memory_space<vmem>>, %arg3: memref<1x512xf32, #tpu.memory_space<vmem>>, %arg4: memref<512x384xbf16, #tpu.memory_space<vmem>>, %arg5: memref<1x384xf32, #tpu.memory_space<vmem>>, %arg6: memref<384x128xbf16, #tpu.memory_space<vmem>>, %arg7: memref<1x128xf32, #tpu.memory_space<vmem>>, %arg8: memref<8x128xf32, #tpu.memory_space<vmem>>) attributes {dimension_semantics = [#tpu.dimension_semantics<parallel>], iteration_bounds = array<i64: 1>, scalar_prefetch = 0 : i64, scratch_operands = 0 : i64, tpu.core_type = #tpu.core_type<tc>, window_params = [{transform_indices = @transform_0, window_bounds = array<i64: 8, 128>}, {pipeline_mode = #tpu.pipeline_mode<synchronous>, transform_indices = @transform_1, window_bounds = array<i64: 128, 512>}, {pipeline_mode = #tpu.pipeline_mode<synchronous>, transform_indices = @transform_2, window_bounds = array<i64: 1, 512>}, {pipeline_mode = #tpu.pipeline_mode<synchronous>, transform_indices = @transform_3, window_bounds = array<i64: 512, 384>}, {pipeline_mode = #tpu.pipeline_mode<synchronous>, transform_indices = @transform_4, window_bounds = array<i64: 1, 384>}, {pipeline_mode = #tpu.pipeline_mode<synchronous>, transform_indices = @transform_5, window_bounds = array<i64: 384, 128>}, {pipeline_mode = #tpu.pipeline_mode<synchronous>, transform_indices = @transform_6, window_bounds = array<i64: 1, 128>}, {transform_indices = @transform_7, window_bounds = array<i64: 8, 128>}]} {
    %c0 = arith.constant 0 : index
    %c0_0 = arith.constant 0 : index
    %0 = vector.load %arg3[%c0, %c0_0] : memref<1x512xf32, #tpu.memory_space<vmem>>, vector<1x512xf32>
    %c0_1 = arith.constant 0 : index
    %c0_2 = arith.constant 0 : index
    %1 = vector.load %arg5[%c0_1, %c0_2] : memref<1x384xf32, #tpu.memory_space<vmem>>, vector<1x384xf32>
    %c0_3 = arith.constant 0 : index
    %c0_4 = arith.constant 0 : index
    %2 = vector.load %arg7[%c0_3, %c0_4] : memref<1x128xf32, #tpu.memory_space<vmem>>, vector<1x128xf32>
    %c0_5 = arith.constant 0 : index
    %c0_6 = arith.constant 0 : index
    %3 = vector.load %arg1[%c0_5, %c0_6] : memref<8x128xf32, #tpu.memory_space<vmem>>, vector<8x128xf32>
    %4 = arith.truncf %3 : vector<8x128xf32> to vector<8x128xbf16>
    %c0_7 = arith.constant 0 : index
    %c0_8 = arith.constant 0 : index
    %5 = vector.load %arg2[%c0_7, %c0_8] : memref<128x512xbf16, #tpu.memory_space<vmem>>, vector<128x512xbf16>
    %cst = arith.constant dense<0.000000e+00> : vector<8x512xf32>
    %6 = tpu.matmul %4, %5, %cst {dimension_numbers = #tpu.dot_dimension_numbers<[1], [0], [0], [1], [0, 0, 1, 1], [], []>} : vector<8x128xbf16>, vector<128x512xbf16>, vector<8x512xf32> -> vector<8x512xf32>
    %7 = vector.broadcast %0 : vector<1x512xf32> to vector<8x512xf32>
    %8 = arith.addf %6, %7 : vector<8x512xf32>
    %cst_9 = arith.constant 0.000000e+00 : f32
    %9 = vector.broadcast %cst_9 : f32 to vector<8x512xf32>
    %10 = arith.maximumf %8, %9 : vector<8x512xf32>
    %11 = arith.truncf %10 : vector<8x512xf32> to vector<8x512xbf16>
    %c0_10 = arith.constant 0 : index
    %c0_11 = arith.constant 0 : index
    %12 = vector.load %arg4[%c0_10, %c0_11] : memref<512x384xbf16, #tpu.memory_space<vmem>>, vector<512x384xbf16>
    %cst_12 = arith.constant dense<0.000000e+00> : vector<8x384xf32>
    %13 = tpu.matmul %11, %12, %cst_12 {dimension_numbers = #tpu.dot_dimension_numbers<[1], [0], [0], [1], [0, 0, 1, 1], [], []>} : vector<8x512xbf16>, vector<512x384xbf16>, vector<8x384xf32> -> vector<8x384xf32>
    %14 = vector.broadcast %1 : vector<1x384xf32> to vector<8x384xf32>
    %15 = arith.addf %13, %14 : vector<8x384xf32>
    %cst_13 = arith.constant 0.000000e+00 : f32
    %16 = vector.broadcast %cst_13 : f32 to vector<8x384xf32>
    %17 = arith.maximumf %15, %16 : vector<8x384xf32>
    %18 = arith.truncf %17 : vector<8x384xf32> to vector<8x384xbf16>
    %c0_14 = arith.constant 0 : index
    %c0_15 = arith.constant 0 : index
    %19 = vector.load %arg6[%c0_14, %c0_15] : memref<384x128xbf16, #tpu.memory_space<vmem>>, vector<384x128xbf16>
    %cst_16 = arith.constant dense<0.000000e+00> : vector<8x128xf32>
    %20 = tpu.matmul %18, %19, %cst_16 {dimension_numbers = #tpu.dot_dimension_numbers<[1], [0], [0], [1], [0, 0, 1, 1], [], []>} : vector<8x384xbf16>, vector<384x128xbf16>, vector<8x128xf32> -> vector<8x128xf32>
    %21 = vector.broadcast %2 : vector<1x128xf32> to vector<8x128xf32>
    %22 = arith.addf %20, %21 : vector<8x128xf32>
    %23 = math.tanh %22 : vector<8x128xf32>
    %cst_17 = arith.constant 2.000000e+00 : f32
    %24 = vector.broadcast %cst_17 : f32 to vector<8x128xf32>
    %25 = arith.mulf %24, %23 : vector<8x128xf32>
    %c0_18 = arith.constant 0 : index
    %c0_19 = arith.constant 0 : index
    %26 = vector.load %arg8[%c0_18, %c0_19] : memref<8x128xf32, #tpu.memory_space<vmem>>, vector<8x128xf32>
    tpu.vector_store %arg8[%c0_18, %c0_19], %25 {strides = array<i32>} : memref<8x128xf32, #tpu.memory_space<vmem>>, vector<8x128xf32>,
    return
  }
  func.func @transform_0(%arg0: i32) -> (i32, i32) {
    %c0_i32 = arith.constant 0 : i32
    %c0_i32_0 = arith.constant 0 : i32
    return %arg0, %c0_i32 : i32, i32
  }
  func.func @transform_1(%arg0: i32) -> (i32, i32) {
    %c0_i32 = arith.constant 0 : i32
    %c0_i32_0 = arith.constant 0 : i32
    %c0_i32_1 = arith.constant 0 : i32
    return %c0_i32, %c0_i32_0 : i32, i32
  }
  func.func @transform_2(%arg0: i32) -> (i32, i32) {
    %c0_i32 = arith.constant 0 : i32
    %c0_i32_0 = arith.constant 0 : i32
    %c0_i32_1 = arith.constant 0 : i32
    return %c0_i32, %c0_i32_0 : i32, i32
  }
  func.func @transform_3(%arg0: i32) -> (i32, i32) {
    %c0_i32 = arith.constant 0 : i32
    %c0_i32_0 = arith.constant 0 : i32
    %c0_i32_1 = arith.constant 0 : i32
    return %c0_i32, %c0_i32_0 : i32, i32
  }
  func.func @transform_4(%arg0: i32) -> (i32, i32) {
    %c0_i32 = arith.constant 0 : i32
    %c0_i32_0 = arith.constant 0 : i32
    %c0_i32_1 = arith.constant 0 : i32
    return %c0_i32, %c0_i32_0 : i32, i32
  }
  func.func @transform_5(%arg0: i32) -> (i32, i32) {
    %c0_i32 = arith.constant 0 : i32
    %c0_i32_0 = arith.constant 0 : i32
    %c0_i32_1 = arith.constant 0 : i32
    return %c0_i32, %c0_i32_0 : i32, i32
  }
  func.func @transform_6(%arg0: i32) -> (i32, i32) {
    %c0_i32 = arith.constant 0 : i32
    %c0_i32_0 = arith.constant 0 : i32
    %c0_i32_1 = arith.constant 0 : i32
    return %c0_i32, %c0_i32_0 : i32, i32
  }
  func.func @transform_7(%arg0: i32) -> (i32, i32) {
    %c0_i32 = arith.constant 0 : i32
    %c0_i32_0 = arith.constant 0 : i32
    return %arg0, %c0_i32 : i32, i32
  }
}

</mosaic_0001>

<bundles_post_ra>
// kernel: tpu_custom_call.1
= control target key start
LH: loop header
LB: loop body
LE: loop exit
PB: predicated region body
PF: predicated region fallthrough
CT: control target
= control target key end

     0   :  { %12 = vsyncpa [#allocation3], 0  ;;  %s2246_s0 = inlined_call_operand.hbm [shape: f32[8,128], index: 0, kind: input, shape index: {}]   ;;  %s2247_s1 = inlined_call_operand.hbm [shape: bf16[128,512], index: 1, kind: input, shape index: {}]   ;;  %s2248_s2 = inlined_call_operand.vmem [shape: f32[1,512], index: 2, kind: input, shape index: {}]   ;;  %s2249_s3 = inlined_call_operand.hbm [shape: bf16[512,384], index: 3, kind: input, shape index: {}]   ;;  %s2250_s4 = inlined_call_operand.vmem [shape: f32[1,384], index: 4, kind: input, shape index: {}]   ;;  %s2251_s5 = inlined_call_operand.hbm [shape: bf16[384,128], index: 5, kind: input, shape index: {}]   ;;  %s2252_s6 = inlined_call_operand.vmem [shape: f32[1,128], index: 6, kind: input, shape index: {}]   ;;  %s2253_s7 = inlined_call_operand.hbm [shape: f32[8,128], index: 7, kind: output, shape index: {}]  }
   0x1   :  { %13 = vsyncpa [#allocation6], 0 }
   0x2   :  { %14 = vsyncpa [#allocation9], 0 }
   0x3   :  { %15 = vsyncpa [#allocation4], 0  ;;  %s2099_s24 = smov [#allocation5]   ;;  %s1981_s28 = scalar_lea.hbm %s2247_s1, 4096 }
   0x4   :  { %s31_s25 = sshll.u32 %s2099_s24, 4  ;;  %p1982_p0 = scmp.ne.s32.totalorder %s2247_s1, %s1981_s28  ;;  %s32_s25 = int_to_ptr.vmem [resolvable:$true] %s31_s25 }
   0x5   :  { %p1985_p1 = scmp.lt.u32.totalorder %s1981_s28, %s2247_s1 }
   0x7   :  { %p1987_p2 = pnand %p1985_p1, %p1982_p0 }
   0x9   :  { %1990 = shalt.err (!%p1987_p2)
}
   0xa   :  { %s1991_s10 = scalar_lea.vmem %s32_s25, 4096  ;;  %p1996_p4 = scmp.lt.s32.totalorder %s32_s25, %s32_s25 }
   0xb   :  { %p1992_p3 = scmp.ne.s32.totalorder %s32_s25, %s1991_s10  ;;  %p1997_p5 = scmp.lt.s32.totalorder %s1991_s10, %s1991_s10 }
   0xd   :  { %p1998_p6 = por %p1997_p5, %p1996_p4 }
   0xf   :  { %p1999_p7 = pnand %p1998_p6, %p1992_p3 }
  0x11   :  { %2002 = shalt.err (!%p1999_p7)
}
  0x12   :  { %s2100_s11 = smov 256   ;;  %s2101_s12 = smov 16  }
  0x13   :  { %37 = dma.hbm_to_vmem [thread:$0]  %s2247_s1, 4096, %s32_s25, [#allocation6], %s2100_s11, %s2100_s11, %s2101_s12  }
  0x14   :  { %s2102_s15 = smov [#allocation2]   ;;  %s2103_s17 = smov [#allocation7]  }
  0x15   :  { %s22_s16 = sshll.u32 %s2102_s15, 4  ;;  %s45_s18 = sshll.u32 %s2103_s17, 4  ;;  %s23_s16 = int_to_ptr.vmem [resolvable:$true] %s22_s16  ;;  %s46_s18 = int_to_ptr.vmem [resolvable:$true] %s45_s18 }
  0x16   :  { %s2003_s21 = scalar_lea.hbm %s2246_s0, 128 }
  0x17   :  { %p2004_p8 = scmp.ne.s32.totalorder %s2246_s0, %s2003_s21  ;;  %p2007_p9 = scmp.lt.u32.totalorder %s2003_s21, %s2246_s0 }
  0x19   :  { %p2009_p10 = pnand %p2007_p9, %p2004_p8 }
  0x1b   :  { %2012 = shalt.err (!%p2009_p10)
}
  0x1c   :  { %s2013_s1 = scalar_lea.vmem %s23_s16, 128  ;;  %p2018_p12 = scmp.lt.s32.totalorder %s23_s16, %s23_s16 }
  0x1d   :  { %p2014_p11 = scmp.ne.s32.totalorder %s23_s16, %s2013_s1  ;;  %p2019_p13 = scmp.lt.s32.totalorder %s2013_s1, %s2013_s1 }
  0x1f   :  { %p2020_p0 = por %p2019_p13, %p2018_p12 }
  0x21   :  { %p2021_p1 = pnand %p2020_p0, %p2014_p11 }
  0x23   :  { %2024 = shalt.err (!%p2021_p1)
}
  0x24   :  { %25 = dma.hbm_to_vmem [thread:$0]  %s2246_s0, 128, %s23_s16, [#allocation3]  }
  0x25   :  { %s2025_s30 = scalar_lea.hbm %s2249_s3, 12288 }
  0x26   :  { %p2026_p2 = scmp.ne.s32.totalorder %s2249_s3, %s2025_s30  ;;  %p2029_p3 = scmp.lt.u32.totalorder %s2025_s30, %s2249_s3 }
  0x28   :  { %p2031_p4 = pnand %p2029_p3, %p2026_p2 }
  0x2a   :  { %2034 = shalt.err (!%p2031_p4)
}
  0x2b   :  { %s2035_s12 = scalar_lea.vmem %s46_s18, 12288  ;;  %p2040_p6 = scmp.lt.s32.totalorder %s46_s18, %s46_s18 }
  0x2c   :  { %p2036_p5 = scmp.ne.s32.totalorder %s46_s18, %s2035_s12  ;;  %p2041_p7 = scmp.lt.s32.totalorder %s2035_s12, %s2035_s12 }
  0x2e   :  { %p2042_p8 = por %p2041_p7, %p2040_p6 }
  0x30   :  { %p2043_p9 = pnand %p2042_p8, %p2036_p5 }
  0x32   :  { %2046 = shalt.err (!%p2043_p9)
}
  0x33   :  { %s2104_s0 = smov 192   ;;  %s2105_s13 = smov 12  }
  0x34   :  { %51 = dma.hbm_to_vmem [thread:$0]  %s2249_s3, 12288, %s46_s18, [#allocation6], %s2104_s0, %s2104_s0, %s2105_s13  }
  0x35   :  { %s2106_s16 = smov [#allocation8]   ;;  %s2047_s21 = scalar_lea.hbm %s2251_s5, 3072 }
  0x36   :  { %s59_s17 = sshll.u32 %s2106_s16, 4  ;;  %p2048_p10 = scmp.ne.s32.totalorder %s2251_s5, %s2047_s21  ;;  %s60_s17 = int_to_ptr.vmem [resolvable:$true] %s59_s17 }
  0x37   :  { %p2051_p11 = scmp.lt.u32.totalorder %s2047_s21, %s2251_s5 }
  0x39   :  { %p2053_p12 = pnand %p2051_p11, %p2048_p10 }
  0x3b   :  { %2056 = shalt.err (!%p2053_p12)
}
  0x3c   :  { %s2057_s1 = scalar_lea.vmem %s60_s17, 3072  ;;  %p2062_p0 = scmp.lt.s32.totalorder %s60_s17, %s60_s17 }
  0x3d   :  { %p2058_p13 = scmp.ne.s32.totalorder %s60_s17, %s2057_s1  ;;  %p2063_p1 = scmp.lt.s32.totalorder %s2057_s1, %s2057_s1 }
  0x3f   :  { %p2064_p2 = por %p2063_p1, %p2062_p0 }
  0x41   :  { %p2065_p3 = pnand %p2064_p2, %p2058_p13 }
  0x43   :  { %2068 = shalt.err (!%p2065_p3)
}
  0x44   :  { %s2107_s3 = smov 64   ;;  %s2108_s18 = smov 4  }
  0x45   :  { %65 = dma.hbm_to_vmem [thread:$0]  %s2251_s5, 3072, %s60_s17, [#allocation9], %s2107_s3, %s2107_s3, %s2108_s18  }
  0x46   :  { %2091 = dma.done.wait [#allocation3], 128  }
  0x47   :  { %2092 = vsyncadd [#allocation3], 4294967168 }
  0x48   :  { %2093 = dma.done.wait [#allocation6], 16384  }
  0x49   :  { %2094 = vsyncadd [#allocation6], 4294950912 }
  0x4a   :  { %2095 = dma.done.wait [#allocation9], 3072  }
  0x4b   :  { %2096 = vsyncadd [#allocation9], 4294964224  ;;  %v2109_v0 = vmov 0   ;;  %v1779_v1 = vld [vmem:[#allocation5 + $0x4] ss:$16 sps:$4 sm:$0xff]   ;;  %v84_v26 = vld [vmem:[#allocation2] sm:$0xff] }
  0x4c   :  { %331 = vmatprep.mubr.bf16.mxu0 %v2109_v0  ;;  %372 = vmatprep.mubr.bf16.mxu1 %v2109_v0  ;;  %v1781_v2 = vld [vmem:[#allocation5] ss:$16 sps:$4 sm:$0xff]   ;;  %v1782_v3 = vld [vmem:[#allocation5 + $0x24] ss:$16 sps:$4 sm:$0xff]   ;;  %v1803_v10 = vld [vmem:[#allocation5 + $0xc] ss:$16 sps:$4 sm:$0xff]   ;;  %v85_v30 = vpack.c.bf16 %v84_v26, %v84_v26 }
  0x4d   :  { %299 = vmatprep.subr.bf16.mxu0 %v1779_v1  ;;  %v1784_v4 = vld [vmem:[#allocation5 + $0x20] ss:$16 sps:$4 sm:$0xff]   ;;  %v1785_v5 = vld [vmem:[#allocation5 + $0x44] ss:$16 sps:$4 sm:$0xff]   ;;  %v1805_v11 = vld [vmem:[#allocation5 + $0x8] ss:$16 sps:$4 sm:$0xff]   ;;  %340 = vmatprep.subr.bf16.mxu1 %v1803_v10 }
  0x4e   :  { %300 = vmatpush1.bf16.msra.mxu0 %v1781_v2  ;;  %v1787_v6 = vld [vmem:[#allocation5 + $0x40] ss:$16 sps:$4 sm:$0xff]   ;;  %v1788_v7 = vld [vmem:[#allocation5 + $0x64] ss:$16 sps:$4 sm:$0xff]   ;;  %v1806_v12 = vld [vmem:[#allocation5 + $0x2c] ss:$16 sps:$4 sm:$0xff]   ;;  %341 = vmatpush1.bf16.msra.mxu1 %v1805_v11 }
  0x4f   :  { %301 = vmatprep.subr.bf16.mxu0 %v1782_v3  ;;  %v1790_v8 = vld [vmem:[#allocation5 + $0x60] ss:$16 sps:$4 sm:$0xff]   ;;  %v1791_v9 = vld [vmem:[#allocation5 + $0x84] ss:$16 sps:$4 sm:$0xff]   ;;  %v1808_v14 = vld [vmem:[#allocation5 + $0x28] ss:$16 sps:$4 sm:$0xff]   ;;  %342 = vmatprep.subr.bf16.mxu1 %v1806_v12 }
  0x50   :  { %v1793_v13 = vld [vmem:[#allocation5 + $0x80] ss:$16 sps:$4 sm:$0xff]   ;;  %v1809_v15 = vld [vmem:[#allocation5 + $0x4c] ss:$16 sps:$4 sm:$0xff]   ;;  %v1794_v16 = vld [vmem:[#allocation5 + $0xa4] ss:$16 sps:$4 sm:$0xff]  }
  0x51   :  { %v1796_v17 = vld [vmem:[#allocation5 + $0xa0] ss:$16 sps:$4 sm:$0xff]   ;;  %v1811_v18 = vld [vmem:[#allocation5 + $0x48] ss:$16 sps:$4 sm:$0xff]   ;;  %v1812_v19 = vld [vmem:[#allocation5 + $0x6c] ss:$16 sps:$4 sm:$0xff]  }
  0x52   :  { %302 = vmatpush1.bf16.msra.mxu0 %v1784_v4  ;;  %343 = vmatpush1.bf16.msra.mxu1 %v1808_v14  ;;  %v1797_v20 = vld [vmem:[#allocation5 + $0xc4] ss:$16 sps:$4 sm:$0xff]   ;;  %v1799_v21 = vld [vmem:[#allocation5 + $0xc0] ss:$16 sps:$4 sm:$0xff]   ;;  %v1814_v22 = vld [vmem:[#allocation5 + $0x68] ss:$16 sps:$4 sm:$0xff]  }
  0x53   :  { %303 = vmatprep.subr.bf16.mxu0 %v1785_v5  ;;  %344 = vmatprep.subr.bf16.mxu1 %v1809_v15  ;;  %v1815_v23 = vld [vmem:[#allocation5 + $0x8c] ss:$16 sps:$4 sm:$0xff]   ;;  %v1800_v24 = vld [vmem:[#allocation5 + $0xe4] ss:$16 sps:$4 sm:$0xff]   ;;  %v1802_v25 = vld [vmem:[#allocation5 + $0xe0] ss:$16 sps:$4 sm:$0xff]  }
  0x54   :  { %v1817_v27 = vld [vmem:[#allocation5 + $0x88] ss:$16 sps:$4 sm:$0xff]   ;;  %v1818_v28 = vld [vmem:[#allocation5 + $0xac] ss:$16 sps:$4 sm:$0xff]   ;;  %v1829_v29 = vld [vmem:[#allocation7 + $0x4] ss:$12 sps:$4 sm:$0xff]  }
  0x55   :  { %v1820_v31 = vld [vmem:[#allocation5 + $0xa8] ss:$16 sps:$4 sm:$0xff]   ;;  %v1821_v32 = vld [vmem:[#allocation5 + $0xcc] ss:$16 sps:$4 sm:$0xff]   ;;  %v1835_v38 = vld [vmem:[#allocation7 + $0x34] ss:$12 sps:$4 sm:$0xff]  }
  0x56   :  { %304 = vmatpush1.bf16.msra.mxu0 %v1787_v6  ;;  %345 = vmatpush1.bf16.msra.mxu1 %v1811_v18  ;;  %v1827_v33 = vld [vmem:[#allocation7] ss:$12 sps:$4 sm:$0xff]   ;;  %v1832_v34 = vld [vmem:[#allocation7 + $0x1c] ss:$12 sps:$4 sm:$0xff]   ;;  %v1830_v37 = vld [vmem:[#allocation7 + $0x18] ss:$12 sps:$4 sm:$0xff]  }
  0x57   :  { %305 = vmatprep.subr.bf16.mxu0 %v1788_v7  ;;  %346 = vmatprep.subr.bf16.mxu1 %v1812_v19  ;;  %v1823_v35 = vld [vmem:[#allocation5 + $0xc8] ss:$16 sps:$4 sm:$0xff]   ;;  %v1824_v36 = vld [vmem:[#allocation5 + $0xec] ss:$16 sps:$4 sm:$0xff]   ;;  %v1841_v46 = vld [vmem:[#allocation7 + $0x64] ss:$12 sps:$4 sm:$0xff]  }
  0x58   :  { %v1826_v39 = vld [vmem:[#allocation5 + $0xe8] ss:$16 sps:$4 sm:$0xff]   ;;  %v1833_v40 = vld [vmem:[#allocation7 + $0x30] ss:$12 sps:$4 sm:$0xff]   ;;  %v1859_v45 = vld [vmem:[#allocation7 + $0xe0] ss:$12 sps:$4 sm:$0xff]  }
  0x59   :  { %v1854_v41 = vld [vmem:[#allocation7 + $0xc8] ss:$12 sps:$4 sm:$0xff]   ;;  %v1838_v42 = vld [vmem:[#allocation7 + $0x4c] ss:$12 sps:$4 sm:$0xff]   ;;  %v1869_v53 = vld [vmem:[#allocation7 + $0x110] ss:$12 sps:$4 sm:$0xff]  }
  0x5a   :  { %306 = vmatpush1.bf16.msra.mxu0 %v1790_v8  ;;  %347 = vmatpush1.bf16.msra.mxu1 %v1814_v22  ;;  %v1855_v43 = vld [vmem:[#allocation7 + $0x8] ss:$12 sps:$4 sm:$0xff]   ;;  %v1839_v47 = vld [vmem:[#allocation7 + $0x60] ss:$12 sps:$4 sm:$0xff]   ;;  %v1864_v49 = vld [vmem:[#allocation7 + $0xf8] ss:$12 sps:$4 sm:$0xff]  }
  0x5b   :  { %307 = vmatprep.subr.bf16.mxu0 %v1791_v9  ;;  %348 = vmatprep.subr.bf16.mxu1 %v1815_v23  ;;  %v1836_v44 = vld [vmem:[#allocation7 + $0x48] ss:$12 sps:$4 sm:$0xff]   ;;  %v1860_v48 = vld [vmem:[#allocation7 + $0x20] ss:$12 sps:$4 sm:$0xff]   ;;  %v1842_v51 = vld [vmem:[#allocation7 + $0x78] ss:$12 sps:$4 sm:$0xff]  }
  0x5c   :  { %v1844_v50 = vld [vmem:[#allocation7 + $0x7c] ss:$12 sps:$4 sm:$0xff]   ;;  %v1865_v52 = vld [vmem:[#allocation7 + $0x38] ss:$12 sps:$4 sm:$0xff]   ;;  %v1847_v54 = vld [vmem:[#allocation7 + $0x94] ss:$12 sps:$4 sm:$0xff]  }
  0x5d   :  { %v1870_v55 = vld [vmem:[#allocation7 + $0x50] ss:$12 sps:$4 sm:$0xff]   ;;  %v1874_v57 = vld [vmem:[#allocation7 + $0x128] ss:$12 sps:$4 sm:$0xff]   ;;  %v1850_v58 = vld [vmem:[#allocation7 + $0xac] ss:$12 sps:$4 sm:$0xff]  }
  0x5e   :  { %308 = vmatpush1.bf16.msra.mxu0 %v1793_v13  ;;  %349 = vmatpush1.bf16.msra.mxu1 %v1817_v27  ;;  %v1845_v56 = vld [vmem:[#allocation7 + $0x90] ss:$12 sps:$4 sm:$0xff]   ;;  %v1875_v59 = vld [vmem:[#allocation7 + $0x68] ss:$12 sps:$4 sm:$0xff]   ;;  %v1879_v61 = vld [vmem:[#allocation7 + $0x140] ss:$12 sps:$4 sm:$0xff]  }
  0x5f   :  { %309 = vmatprep.subr.bf16.mxu0 %v1794_v16  ;;  %350 = vmatprep.subr.bf16.mxu1 %v1818_v28  ;;  %v1848_v60 = vld [vmem:[#allocation7 + $0xa8] ss:$12 sps:$4 sm:$0xff]   ;;  %v1853_v62 = vld [vmem:[#allocation7 + $0xc4] ss:$12 sps:$4 sm:$0xff]   ;;  %v1880_v63 = vld [vmem:[#allocation7 + $0x80] ss:$12 sps:$4 sm:$0xff]  }
  0x60   :  { %v1851_v0 = vld [vmem:[#allocation7 + $0xc0] ss:$12 sps:$4 sm:$0xff]   ;;  %v1858_v1 = vld [vmem:[#allocation7 + $0xdc] ss:$12 sps:$4 sm:$0xff]   ;;  %v1856_v2 = vld [vmem:[#allocation7 + $0xd8] ss:$12 sps:$4 sm:$0xff]  }
  0x61   :  { %v1863_v3 = vld [vmem:[#allocation7 + $0xf4] ss:$12 sps:$4 sm:$0xff]   ;;  %v1861_v4 = vld [vmem:[#allocation7 + $0xf0] ss:$12 sps:$4 sm:$0xff]   ;;  %v1868_v5 = vld [vmem:[#allocation7 + $0x10c] ss:$12 sps:$4 sm:$0xff]  }
  0x62   :  { %310 = vmatpush1.bf16.msra.mxu0 %v1796_v17  ;;  %351 = vmatpush1.bf16.msra.mxu1 %v1820_v31  ;;  %v1866_v6 = vld [vmem:[#allocation7 + $0x108] ss:$12 sps:$4 sm:$0xff]   ;;  %v1873_v7 = vld [vmem:[#allocation7 + $0x124] ss:$12 sps:$4 sm:$0xff]   ;;  %v1871_v8 = vld [vmem:[#allocation7 + $0x120] ss:$12 sps:$4 sm:$0xff]  }
  0x63   :  { %311 = vmatprep.subr.bf16.mxu0 %v1797_v20  ;;  %352 = vmatprep.subr.bf16.mxu1 %v1821_v32  ;;  %v1878_v9 = vld [vmem:[#allocation7 + $0x13c] ss:$12 sps:$4 sm:$0xff]   ;;  %v1876_v10 = vld [vmem:[#allocation7 + $0x138] ss:$12 sps:$4 sm:$0xff]   ;;  %v1883_v11 = vld [vmem:[#allocation7 + $0x154] ss:$12 sps:$4 sm:$0xff]  }
  0x64   :  { %v1884_v12 = vld [vmem:[#allocation7 + $0x158] ss:$12 sps:$4 sm:$0xff]   ;;  %v1881_v13 = vld [vmem:[#allocation7 + $0x150] ss:$12 sps:$4 sm:$0xff]   ;;  %v1886_v17 = vld [vmem:[#allocation7 + $0x168] ss:$12 sps:$4 sm:$0xff]  }
  0x65   :  { %v1885_v14 = vld [vmem:[#allocation7 + $0x98] ss:$12 sps:$4 sm:$0xff]   ;;  %v1889_v16 = vld [vmem:[#allocation7 + $0x170] ss:$12 sps:$4 sm:$0xff]   ;;  %v1894_v20 = vld [vmem:[#allocation7 + $0x248] ss:$12 sps:$4 sm:$0xff]  }
  0x66   :  { %312 = vmatpush1.bf16.msra.mxu0 %v1799_v21  ;;  %353 = vmatpush1.bf16.msra.mxu1 %v1823_v35  ;;  %v1888_v15 = vld [vmem:[#allocation7 + $0x16c] ss:$12 sps:$4 sm:$0xff]   ;;  %v1890_v18 = vld [vmem:[#allocation7 + $0xb0] ss:$12 sps:$4 sm:$0xff]   ;;  %v119_v21 = vlaneseq  ;;  %vm2111_vm0 = vmmov 0   ;;  %s2112_s8 = smov [#allocation10]  }
  0x67   :  { %313 = vmatprep.subr.bf16.mxu0 %v1800_v24  ;;  %354 = vmatprep.subr.bf16.mxu1 %v1824_v36  ;;  %v1893_v19 = vld [vmem:[#allocation7 + $0x184] ss:$12 sps:$4 sm:$0xff]   ;;  %v2207_v24 = vld [vmem:[%s2248_s2] sm:$0xf]  ;;  %s1500_s9 = sshll.u32 %s2112_s8, 4  ;;  %s1501_s9 = int_to_ptr.vmem [resolvable:$true] %s1500_s9 }
  0x68   :  { %v2201_v22 = vshrl.u32 %v119_v21, 7  ;;  %v1934_v21 = vld [vmem:[#allocation7 + $0x258] ss:$12 sps:$4 sm:$0xff]   ;;  %s2069_s10 = scalar_lea.vmem %s1501_s9, 128  ;;  %p2074_p5 = scmp.lt.s32.totalorder %s1501_s9, %s1501_s9 }
  0x69   :  { %p2070_p4 = scmp.ne.s32.totalorder %s1501_s9, %s2069_s10  ;;  %p2075_p6 = scmp.lt.s32.totalorder %s2069_s10, %s2069_s10 }
  0x6a   :  { %314 = vmatpush1.bf16.msra.mxu0 %v1802_v25  ;;  %355 = vmatpush1.bf16.msra.mxu1 %v1826_v39  ;;  %v121_v23 = vsub.s32 0, %v2201_v22  ;;  %v125_v25 = vsub.s32 1, %v2201_v22  ;;  %v133_v36 = vsub.s32 3, %v2201_v22  ;;  %v1895_v39 = vld [vmem:[#allocation7 + $0x188] ss:$12 sps:$4 sm:$0xff]  }
  0x6b   :  { %1045 = vmatprep.subr.bf16.mxu0 %v1829_v29  ;;  %1664 = vmatprep.subr.bf16.mxu1 %v1854_v41  ;;  %v1898_v41 = vld [vmem:[#allocation7 + $0x19c] ss:$12 sps:$4 sm:$0xff]   ;;  %p2076_p7 = por %p2075_p6, %p2074_p5 }
  0x6c   :  { %v122_v26 = vrot.slane %v2207_v24, %v121_v23  ;;  %v126_v27 = vrot.slane %v2207_v24, %v125_v25 }
  0x6d   :  { %332 = vmatmul.mubr.bf16.vlgmr.msra.gmra.mrb[0].mxu0 %v85_v30  ;;  %373 = vmatmul.mubr.bf16.vlgmr.msra.gmra.mrb[0].mxu1 %v85_v30  ;;  %p2077_p8 = pnand %p2076_p7, %p2070_p4 }
  0x6e   :  { %1046 = vmatpush1.bf16.msra.mxu0 %v1827_v33  ;;  %1665 = vmatpush3.bf16.msra.mxu1 %v1855_v43  ;;  %v134_v43 = vrot.slane %v2207_v24, %v133_v36  ;;  %v1952_v36 = vld [vmem:[#allocation7 + $0x2e8] ss:$12 sps:$4 sm:$0xff]  }
  0x6f   :  { %1047 = vmatprep.subr.bf16.mxu0 %v1832_v34  ;;  %1666 = vmatprep.subr.bf16.mxu1 %v1859_v45  ;;  %v1900_v45 = vld [vmem:[#allocation7 + $0x1a0] ss:$12 sps:$4 sm:$0xff]  }
  0x72   :  { %1048 = vmatpush1.bf16.msra.mxu0 %v1830_v37  ;;  %1667 = vmatpush3.bf16.msra.mxu1 %v1860_v48 }
  0x73   :  { %1049 = vmatprep.subr.bf16.mxu0 %v1835_v38  ;;  %1668 = vmatprep.subr.bf16.mxu1 %v1864_v49  ;;  %v1891_v38 = vld [vmem:[#allocation7 + $0x180] ss:$12 sps:$4 sm:$0xff]  }
  0x76   :  { %1050 = vmatpush1.bf16.msra.mxu0 %v1833_v40  ;;  %1669 = vmatpush3.bf16.msra.mxu1 %v1865_v52  ;;  %v1901_v52 = vld [vmem:[#allocation7 + $0x1b0] ss:$12 sps:$4 sm:$0xff]  }
  0x77   :  { %1051 = vmatprep.subr.bf16.mxu0 %v1838_v42  ;;  %1670 = vmatprep.subr.bf16.mxu1 %v1869_v53  ;;  %v1899_v42 = vld [vmem:[#allocation7 + $0x260] ss:$12 sps:$4 sm:$0xff]   ;;  %v1905_v53 = vld [vmem:[#allocation7 + $0x1b8] ss:$12 sps:$4 sm:$0xff]  }
  0x7a   :  { %1052 = vmatpush1.bf16.msra.mxu0 %v1836_v44  ;;  %1671 = vmatpush3.bf16.msra.mxu1 %v1870_v55  ;;  %v1896_v44 = vld [vmem:[#allocation7 + $0x198] ss:$12 sps:$4 sm:$0xff]  }
  0x7b   :  { %1053 = vmatprep.subr.bf16.mxu0 %v1841_v46  ;;  %1672 = vmatprep.subr.bf16.mxu1 %v1874_v57  ;;  %v1903_v46 = vld [vmem:[#allocation7 + $0x1b4] ss:$12 sps:$4 sm:$0xff]   ;;  %v1908_v55 = vld [vmem:[#allocation7 + $0x1cc] ss:$12 sps:$4 sm:$0xff]  }
  0x7e   :  { %1054 = vmatpush1.bf16.msra.mxu0 %v1839_v47  ;;  %1673 = vmatpush3.bf16.msra.mxu1 %v1875_v59  ;;  %v1904_v47 = vld [vmem:[#allocation7 + $0x278] ss:$12 sps:$4 sm:$0xff]   ;;  %v1906_v59 = vld [vmem:[#allocation7 + $0x1c8] ss:$12 sps:$4 sm:$0xff]  }
  0x7f   :  { %1055 = vmatprep.subr.bf16.mxu0 %v1844_v50  ;;  %1674 = vmatprep.subr.bf16.mxu1 %v1879_v61  ;;  %v1913_v61 = vld [vmem:[#allocation7 + $0x1e4] ss:$12 sps:$4 sm:$0xff]  }
  0x82   :  { %1056 = vmatpush1.bf16.msra.mxu0 %v1842_v51  ;;  %1675 = vmatpush3.bf16.msra.mxu1 %v1880_v63  ;;  %v129_v63 = vsub.s32 2, %v2201_v22  ;;  %v1973_v22 = vld [vmem:[#allocation8 + $0x90] sm:$0xff]  }
  0x83   :  { %1057 = vmatprep.subr.bf16.mxu0 %v1847_v54  ;;  %1676 = vmatprep.subr.bf16.mxu1 %v1884_v12  ;;  %v1928_v12 = vld [vmem:[#allocation7 + $0x22c] ss:$12 sps:$4 sm:$0xff]  }
  0x86   :  { %1058 = vmatpush1.bf16.msra.mxu0 %v1845_v56  ;;  %1677 = vmatpush3.bf16.msra.mxu1 %v1885_v14  ;;  %v1909_v56 = vld [vmem:[#allocation7 + $0x290] ss:$12 sps:$4 sm:$0xff]  }
  0x87   :  { %1059 = vmatprep.subr.bf16.mxu0 %v1850_v58  ;;  %1678 = vmatprep.subr.bf16.mxu1 %v1889_v16  ;;  %v1930_v16 = vld [vmem:[#allocation7 + $0x230] ss:$12 sps:$4 sm:$0xff]  }
  0x8a   :  { %1060 = vmatpush1.bf16.msra.mxu0 %v1848_v60  ;;  %1679 = vmatpush3.bf16.msra.mxu1 %v1890_v18  ;;  %v1910_v60 = vld [vmem:[#allocation7 + $0x1d0] ss:$12 sps:$4 sm:$0xff]  }
  0x8b   :  { %1061 = vmatprep.subr.bf16.mxu0 %v1853_v62  ;;  %1686 = vmatprep.subr.bf16.mxu1 %v1894_v20  ;;  %v1914_v62 = vld [vmem:[#allocation7 + $0x2a8] ss:$12 sps:$4 sm:$0xff]  }
  0x8c   :  { %v1936_v20 = vld [vmem:[#allocation7 + $0x25c] ss:$12 sps:$4 sm:$0xff]  }
  0x8e   :  { %1062 = vmatpush1.bf16.msra.mxu0 %v1851_v0  ;;  %v1911_v0 = vld [vmem:[#allocation7 + $0x1e0] ss:$12 sps:$4 sm:$0xff]  }
  0x8f   :  { %1063 = vmatprep.subr.bf16.mxu0 %v1858_v1  ;;  %v1915_v1 = vld [vmem:[#allocation7 + $0x1e8] ss:$12 sps:$4 sm:$0xff]  }
  0x92   :  { %1064 = vmatpush1.bf16.msra.mxu0 %v1856_v2  ;;  %v1918_v2 = vld [vmem:[#allocation7 + $0x1fc] ss:$12 sps:$4 sm:$0xff]  }
  0x93   :  { %1065 = vmatprep.subr.bf16.mxu0 %v1863_v3  ;;  %v1919_v3 = vld [vmem:[#allocation7 + $0x2c0] ss:$12 sps:$4 sm:$0xff]  }
  0x96   :  { %1066 = vmatpush1.bf16.msra.mxu0 %v1861_v4  ;;  %v130_v4 = vrot.slane %v2207_v24, %v129_v63  ;;  %v1939_v24 = vld [vmem:[#allocation7 + $0x274] ss:$12 sps:$4 sm:$0xff]  }
  0x97   :  { %1067 = vmatprep.subr.bf16.mxu0 %v1868_v5  ;;  %v1916_v5 = vld [vmem:[#allocation7 + $0x1f8] ss:$12 sps:$4 sm:$0xff]  }
  0x9a   :  { %1068 = vmatpush1.bf16.msra.mxu0 %v1866_v6  ;;  %v1920_v6 = vld [vmem:[#allocation7 + $0x200] ss:$12 sps:$4 sm:$0xff]  }
  0x9b   :  { %1069 = vmatprep.subr.bf16.mxu0 %v1873_v7  ;;  %v1923_v7 = vld [vmem:[#allocation7 + $0x214] ss:$12 sps:$4 sm:$0xff]  }
  0x9e   :  { %1070 = vmatpush1.bf16.msra.mxu0 %v1871_v8  ;;  %v1924_v8 = vld [vmem:[#allocation7 + $0x2d8] ss:$12 sps:$4 sm:$0xff]  }
  0x9f   :  { %1071 = vmatprep.subr.bf16.mxu0 %v1878_v9 }
  0xa2   :  { %1072 = vmatpush1.bf16.msra.mxu0 %v1876_v10  ;;  %v1921_v10 = vld [vmem:[#allocation7 + $0x210] ss:$12 sps:$4 sm:$0xff]  }
  0xa3   :  { %1073 = vmatprep.subr.bf16.mxu0 %v1883_v11  ;;  %v1925_v11 = vld [vmem:[#allocation7 + $0x218] ss:$12 sps:$4 sm:$0xff]  }
  0xa6   :  { %1074 = vmatpush1.bf16.msra.mxu0 %v1881_v13  ;;  %v1929_v13 = vld [vmem:[#allocation7 + $0x2f0] ss:$12 sps:$4 sm:$0xff]  }
  0xa7   :  { %1075 = vmatprep.subr.bf16.mxu0 %v1888_v15  ;;  %v1926_v15 = vld [vmem:[#allocation7 + $0x228] ss:$12 sps:$4 sm:$0xff]  }
  0xaa   :  { %1076 = vmatpush1.bf16.msra.mxu0 %v1886_v17  ;;  %v1933_v17 = vld [vmem:[#allocation7 + $0x244] ss:$12 sps:$4 sm:$0xff]  }
  0xab   :  { %1086 = vmatprep.subr.bf16.mxu0 %v1893_v19  ;;  %v1931_v19 = vld [vmem:[#allocation7 + $0x240] ss:$12 sps:$4 sm:$0xff]  }
 0x140   :  { %v333_v28 = vpop.f32.mrb[0].mxu0  ;;  %v374_v48 = vpop.f32.mrb[0].mxu1 }
 0x141   :  { %v334_v29 = vadd.f32 %v333_v28, %v122_v26  ;;  %v335_v30 = vpop.f32.mrb[1].mxu0  ;;  %v376_v49 = vpop.f32.mrb[1].mxu1  ;;  %v375_v9 = vadd.f32 %v374_v48, %v130_v4  ;;  %v1937_v26 = vld [vmem:[#allocation7 + $0x270] ss:$12 sps:$4 sm:$0xff]   ;;  %v1940_v28 = vld [vmem:[#allocation7 + $0x288] ss:$12 sps:$4 sm:$0xff]  }
 0x142   :  { %v336_v31 = vadd.f32 %v335_v30, %v126_v27  ;;  %v337_v32 = vpop.f32.mrb[2].mxu0  ;;  %v377_v50 = vadd.f32 %v376_v49, %v134_v43  ;;  %v378_v51 = vpop.f32.mrb[2].mxu1  ;;  %v1942_v27 = vld [vmem:[#allocation7 + $0x28c] ss:$12 sps:$4 sm:$0xff]   ;;  %v1967_v49 = vld [vmem:[#allocation8 + $0x70] sm:$0xff]  }
 0x143   :  { %v381_v33 = vmax.f32 %v334_v29, 0.0  ;;  %v338_v34 = vpop.f32.mrb[3].mxu0  ;;  %v379_v54 = vpop.f32.mrb[3].mxu1  ;;  %v383_v14 = vmax.f32 %v375_v9, 0.0  ;;  %v1945_v29 = vld [vmem:[#allocation7 + $0x2a4] ss:$12 sps:$4 sm:$0xff]  }
 0x144   :  { %v382_v35 = vmax.f32 %v336_v31, 0.0  ;;  %v384_v57 = vmax.f32 %v377_v50, 0.0  ;;  %v1943_v30 = vld [vmem:[#allocation7 + $0x2a0] ss:$12 sps:$4 sm:$0xff]   ;;  %v1948_v31 = vld [vmem:[#allocation7 + $0x2bc] ss:$12 sps:$4 sm:$0xff]  }
 0x145   :  { %v385_v40 = vpack.c.bf16 %v381_v33, %v381_v33  ;;  %v387_v18 = vpack.c.bf16 %v383_v14, %v383_v14  ;;  %v1946_v32 = vld [vmem:[#allocation7 + $0x2b8] ss:$12 sps:$4 sm:$0xff]   ;;  %v1951_v33 = vld [vmem:[#allocation7 + $0x2d4] ss:$12 sps:$4 sm:$0xff]   ;;  %v1949_v34 = vld [vmem:[#allocation7 + $0x2d0] ss:$12 sps:$4 sm:$0xff]  }
 0x146   :  { %v386_v37 = vpack.c.bf16 %v382_v35, %v382_v35  ;;  %v388_v58 = vpack.c.bf16 %v384_v57, %v384_v57  ;;  %v1954_v35 = vld [vmem:[#allocation7 + $0x2ec] ss:$12 sps:$4 sm:$0xff]   ;;  %v1968_v50 = vld [vmem:[#allocation8 + $0x30] sm:$0xff]  }
 0x147   :  { %v1961_v43 = vld [vmem:[#allocation8 + $0x58] sm:$0xff]   ;;  %v1966_v48 = vld [vmem:[#allocation8 + $0x28] sm:$0xff]  }
 0x148   :  { %1077 = vmatprep.mubr.bf16.mxu0 %v386_v37  ;;  %1159 = vmatprep.mubr.bf16.mxu1 %v386_v37  ;;  %v1955_v37 = vld [vmem:[#allocation8 + $0x40] sm:$0xff]   ;;  %v1969_v51 = vld [vmem:[#allocation8 + $0x78] sm:$0xff]  }
 0x149   :  { %1078 = vmatmul.mubr.bf16.vlgmr.msra.gmra.mrb[4].mxu0 %v385_v40  ;;  %1160 = vmatmul.mubr.bf16.vlgmr.msra.gmra.mrb[4].mxu1 %v385_v40  ;;  %v1958_v40 = vld [vmem:[#allocation8 + $0x8] sm:$0xff]  }
 0x14a   :  { %1087 = vmatpush1.bf16.msra.mxu0 %v1891_v38  ;;  %1687 = vmatpush3.bf16.msra.mxu1 %v1895_v39  ;;  %v1956_v38 = vld [vmem:[#allocation8] sm:$0xff]   ;;  %v1957_v39 = vld [vmem:[#allocation8 + $0x48] sm:$0xff]  }
 0x14b   :  { %1088 = vmatprep.subr.bf16.mxu0 %v1898_v41  ;;  %1688 = vmatprep.subr.bf16.mxu1 %v1899_v42  ;;  %v1959_v41 = vld [vmem:[#allocation8 + $0x50] sm:$0xff]  }
 0x14c   :  { %1199 = vmatprep.mubr.bf16.mxu1 %v388_v58  ;;  %1118 = vmatprep.mubr.bf16.mxu0 %v388_v58  ;;  %v1960_v42 = vld [vmem:[#allocation8 + $0x10] sm:$0xff]  }
 0x14e   :  { %1089 = vmatpush1.bf16.msra.mxu0 %v1896_v44  ;;  %1689 = vmatpush3.bf16.msra.mxu1 %v1900_v45  ;;  %v1962_v44 = vld [vmem:[#allocation8 + $0x18] sm:$0xff]   ;;  %v1963_v45 = vld [vmem:[#allocation8 + $0x60] sm:$0xff]  }
 0x14f   :  { %1090 = vmatprep.subr.bf16.mxu0 %v1903_v46  ;;  %1690 = vmatprep.subr.bf16.mxu1 %v1904_v47  ;;  %v1964_v46 = vld [vmem:[#allocation8 + $0x20] sm:$0xff]   ;;  %v1965_v47 = vld [vmem:[#allocation8 + $0x68] sm:$0xff]  }
 0x152   :  { %1091 = vmatpush1.bf16.msra.mxu0 %v1901_v52  ;;  %1691 = vmatpush3.bf16.msra.mxu1 %v1905_v53  ;;  %v1970_v52 = vld [vmem:[#allocation8 + $0x38] sm:$0xff]   ;;  %v2110_v53 = vmov 0.0  }
 0x153   :  { %1092 = vmatprep.subr.bf16.mxu0 %v1908_v55  ;;  %1692 = vmatprep.subr.bf16.mxu1 %v1909_v56 }
 0x156   :  { %1093 = vmatpush1.bf16.msra.mxu0 %v1906_v59  ;;  %1693 = vmatpush3.bf16.msra.mxu1 %v1910_v60  ;;  %v82_v59 = vld [vmem:[%s2250_s4] sm:$0x7] }
 0x157   :  { %1094 = vmatprep.subr.bf16.mxu0 %v1913_v61  ;;  %1694 = vmatprep.subr.bf16.mxu1 %v1914_v62  ;;  %v529_v60 = vrot.slane %v82_v59, %v129_v63 }
 0x15a   :  { %1095 = vmatpush1.bf16.msra.mxu0 %v1911_v0  ;;  %1695 = vmatpush3.bf16.msra.mxu1 %v1915_v1 }
 0x15b   :  { %1096 = vmatprep.subr.bf16.mxu0 %v1918_v2  ;;  %1696 = vmatprep.subr.bf16.mxu1 %v1919_v3 }
 0x15e   :  { %1097 = vmatpush1.bf16.msra.mxu0 %v1916_v5  ;;  %1697 = vmatpush3.bf16.msra.mxu1 %v1920_v6  ;;  %v521_v5 = vrot.slane %v82_v59, %v121_v23  ;;  %v525_v6 = vrot.slane %v82_v59, %v125_v25  ;;  %v1974_v23 = vld [vmem:[#allocation8 + $0x98] sm:$0xff]   ;;  %v1975_v25 = vld [vmem:[#allocation8 + $0xa0] sm:$0xff]  }
 0x15f   :  { %1098 = vmatprep.subr.bf16.mxu0 %v1923_v7  ;;  %1698 = vmatprep.subr.bf16.mxu1 %v1924_v8 }
 0x162   :  { %1099 = vmatpush1.bf16.msra.mxu0 %v1921_v10  ;;  %1699 = vmatpush3.bf16.msra.mxu1 %v1925_v11 }
 0x163   :  { %1100 = vmatprep.subr.bf16.mxu0 %v1928_v12  ;;  %1700 = vmatprep.subr.bf16.mxu1 %v1929_v13 }
 0x166   :  { %1101 = vmatpush1.bf16.msra.mxu0 %v1926_v15  ;;  %1701 = vmatpush3.bf16.msra.mxu1 %v1930_v16  ;;  %v1971_v15 = vld [vmem:[#allocation8 + $0x80] sm:$0xff]  }
 0x167   :  { %1102 = vmatprep.subr.bf16.mxu0 %v1933_v17  ;;  %1708 = vmatprep.subr.bf16.mxu1 %v1955_v37  ;;  %v1972_v17 = vld [vmem:[#allocation8 + $0x88] sm:$0xff]  }
 0x169   :  { %1200 = vmatmul.mubr.bf16.vlgmr.msra.gmra.mrb[8].mxu1 %v387_v18 }
 0x16a   :  { %1103 = vmatpush1.bf16.msra.mxu0 %v1931_v19  ;;  %1709 = vmatpush3.bf16.msra.mxu1 %v1956_v38  ;;  %v1977_v19 = vld [vmem:[#allocation8 + $0xb0] sm:$0xff]  }
 0x16b   :  { %1104 = vmatprep.subr.bf16.mxu0 %v1936_v20  ;;  %1710 = vmatprep.subr.bf16.mxu1 %v1957_v39  ;;  %v1978_v20 = vld [vmem:[#allocation8 + $0xb8] sm:$0xff]  }
 0x16e   :  { %1105 = vmatpush1.bf16.msra.mxu0 %v1934_v21  ;;  %1711 = vmatpush3.bf16.msra.mxu1 %v1958_v40 }
 0x16f   :  { %1106 = vmatprep.subr.bf16.mxu0 %v1939_v24  ;;  %1712 = vmatprep.subr.bf16.mxu1 %v1959_v41 }
 0x172   :  { %1107 = vmatpush1.bf16.msra.mxu0 %v1937_v26  ;;  %1713 = vmatpush3.bf16.msra.mxu1 %v1960_v42 }
 0x173   :  { %1108 = vmatprep.subr.bf16.mxu0 %v1942_v27  ;;  %1714 = vmatprep.subr.bf16.mxu1 %v1961_v43 }
 0x176   :  { %1109 = vmatpush1.bf16.msra.mxu0 %v1940_v28  ;;  %1715 = vmatpush3.bf16.msra.mxu1 %v1962_v44 }
 0x177   :  { %1110 = vmatprep.subr.bf16.mxu0 %v1945_v29  ;;  %1716 = vmatprep.subr.bf16.mxu1 %v1963_v45 }
 0x17a   :  { %1111 = vmatpush1.bf16.msra.mxu0 %v1943_v30  ;;  %1717 = vmatpush3.bf16.msra.mxu1 %v1964_v46 }
 0x17b   :  { %1112 = vmatprep.subr.bf16.mxu0 %v1948_v31  ;;  %1718 = vmatprep.subr.bf16.mxu1 %v1965_v47  ;;  %v1639_v31 = vld [vmem:[%s2252_s6] ss:$0 sm:$0xff] }
 0x17e   :  { %1113 = vmatpush1.bf16.msra.mxu0 %v1946_v32  ;;  %1719 = vmatpush3.bf16.msra.mxu1 %v1966_v48 }
 0x17f   :  { %1114 = vmatprep.subr.bf16.mxu0 %v1951_v33  ;;  %1720 = vmatprep.subr.bf16.mxu1 %v1967_v49 }
 0x182   :  { %1115 = vmatpush1.bf16.msra.mxu0 %v1949_v34  ;;  %1721 = vmatpush3.bf16.msra.mxu1 %v1968_v50 }
 0x183   :  { %1116 = vmatprep.subr.bf16.mxu0 %v1954_v35  ;;  %1722 = vmatprep.subr.bf16.mxu1 %v1969_v51 }
 0x186   :  { %1117 = vmatpush1.bf16.msra.mxu0 %v1952_v36  ;;  %1723 = vmatpush3.bf16.msra.mxu1 %v1970_v52 }
 0x187   :  { %1739 = vmatprep.subr.bf16.mxu1 %v2110_v53 }
 0x189   :  { %1119 = vmatmul.mubr.bf16.vlgmr.msra.gmra.mrb[4].mxu0 %v387_v18  ;;  %v1976_v18 = vld [vmem:[#allocation8 + $0xa8] sm:$0xff]  }
 0x21c   :  { %v1680_v54 = vpop.f32.mrb[4].mxu1 }
 0x21d   :  { %v1681_v55 = vpop.f32.mrb[5].mxu1 }
 0x21e   :  { %v1682_v56 = vadd.f32 %v1681_v55, %v1680_v54  ;;  %v1683_v57 = vpop.f32.mrb[6].mxu1 }
 0x21f   :  { %v1684_v58 = vpop.f32.mrb[7].mxu1 }
 0x220   :  { %v1162_v0 = vadd.f32 %v1682_v56, %v529_v60 }
 0x23c   :  { %v1702_v61 = vpop.f32.mrb[8].mxu1 }
 0x23d   :  { %v1703_v62 = vpop.f32.mrb[9].mxu1 }
 0x23e   :  { %v1704_v1 = vadd.f32 %v1703_v62, %v1702_v61  ;;  %v1705_v2 = vpop.f32.mrb[10].mxu1 }
 0x23f   :  { %v1706_v3 = vpop.f32.mrb[11].mxu1 }
 0x240   :  { %v1202_v4 = vadd.f32 %v1704_v1, %v1162_v0 }
 0x242   :  { %v1209_v21 = vmax.f32 %v1202_v4, 0.0 }
 0x244   :  { %v1212_v24 = vpack.c.bf16 %v1209_v21, %v1209_v21 }
 0x25c   :  { %v1120_v7 = vpop.f32.mrb[4].mxu0 }
 0x25d   :  { %v1759_v8 = vadd.f32 %v1120_v7, %v521_v5  ;;  %v1122_v9 = vpop.f32.mrb[5].mxu0 }
 0x25e   :  { %v1760_v10 = vadd.f32 %v1122_v9, %v525_v6  ;;  %v1124_v11 = vpop.f32.mrb[6].mxu0 }
 0x25f   :  { %v1207_v12 = vmax.f32 %v1759_v8, 0.0  ;;  %v1125_v63 = vpop.f32.mrb[7].mxu0 }
 0x260   :  { %v1208_v13 = vmax.f32 %v1760_v10, 0.0 }
 0x261   :  { %v1210_v16 = vpack.c.bf16 %v1207_v12, %v1207_v12 }
 0x262   :  { %v1211_v14 = vpack.c.bf16 %v1208_v13, %v1208_v13 }
 0x264   :  { %1443 = vmatprep.mubr.bf16.mxu1 %v1211_v14 }
 0x265   :  { %1444 = vmatmul.mubr.bf16.vlgmr.msra.gmra.mrb[12].mxu1 %v1210_v16 }
 0x266   :  { %1740 = vmatpush3.bf16.msra.mxu1 %v1971_v15  ;;  %1755 = vmatprep.mubr.msk.bf16.mxu1 %vm2111_vm0, %v2110_v53 }
 0x267   :  { %1741 = vmatprep.subr.bf16.mxu1 %v2110_v53 }
 0x26a   :  { %1742 = vmatpush3.bf16.msra.mxu1 %v1972_v17 }
 0x26b   :  { %1743 = vmatprep.subr.bf16.mxu1 %v2110_v53 }
 0x26e   :  { %1744 = vmatpush3.bf16.msra.mxu1 %v1973_v22 }
 0x26f   :  { %1745 = vmatprep.subr.bf16.mxu1 %v2110_v53 }
 0x272   :  { %1746 = vmatpush3.bf16.msra.mxu1 %v1974_v23 }
 0x273   :  { %1747 = vmatprep.subr.bf16.mxu1 %v2110_v53 }
 0x276   :  { %1748 = vmatpush3.bf16.msra.mxu1 %v1975_v25 }
 0x277   :  { %1749 = vmatprep.subr.bf16.mxu1 %v2110_v53 }
 0x27a   :  { %1750 = vmatpush3.bf16.msra.mxu1 %v1976_v18 }
 0x27b   :  { %1751 = vmatprep.subr.bf16.mxu1 %v2110_v53 }
 0x27e   :  { %1752 = vmatpush3.bf16.msra.mxu1 %v1977_v19 }
 0x27f   :  { %1753 = vmatprep.subr.bf16.mxu1 %v2110_v53 }
 0x282   :  { %1754 = vmatpush3.bf16.msra.mxu1 %v1978_v20 }
 0x285   :  { %1756 = vmatmul.mubr.bf16.vlgmr.msra.gmra.mrb[16].mxu1 %v1212_v24 }
 0x338   :  { %v1724_v26 = vpop.f32.mrb[12].mxu1 }
 0x339   :  { %v1725_v27 = vpop.f32.mrb[13].mxu1 }
 0x33a   :  { %v1726_v28 = vadd.f32 %v1725_v27, %v1724_v26  ;;  %v1727_v29 = vpop.f32.mrb[14].mxu1 }
 0x33b   :  { %v1728_v30 = vpop.f32.mrb[15].mxu1 }
 0x33c   :  { %v1446_v32 = vadd.f32 %v1726_v28, %v1639_v31 }
 0x358   :  { %v1485_v33 = vpop.f32.mrb[16].mxu1 }
 0x359   :  { %v1486_v34 = vadd.f32 %v1485_v33, %v1446_v32  ;;  %v1757_v35 = vpop.f32.mrb[17].mxu1 }
 0x35a   :  { %v1488_v36 = vpop.f32.mrb[18].mxu1 }
 0x35b   :  { %1979 = vtanh.f32 %v1486_v34  ;;  %v1758_v37 = vpop.f32.mrb[19].mxu1 }
 0x365   :  { %v1980_v38 = vpop.eup %1979 }
 0x366   :  { %v1492_v39 = vmul.f32 2.0, %v1980_v38 }
 0x368   :  { %1493 = vst [vmem:[#allocation10] sm:$0xff] %v1492_v39 }
 0x369   :  { %2080 = shalt.err (!%p2077_p8)
}
 0x36a   :  { %s2081_s12 = scalar_lea.hbm %s2253_s7, 128 }
 0x36b   :  { %p2082_p9 = scmp.ne.s32.totalorder %s2253_s7, %s2081_s12  ;;  %p2085_p10 = scmp.lt.u32.totalorder %s2081_s12, %s2253_s7 }
 0x36d   :  { %p2087_p11 = pnand %p2085_p10, %p2082_p9 }
 0x36f   :  { %2090 = shalt.err (!%p2087_p11)
}
 0x370   :  { %1503 = dma.vmem_to_hbm [thread:$0]  %s1501_s9, 128, %s2253_s7, [#allocation4]  }
 0x371   :  { %2097 = dma.done.wait [#allocation4], 128  }
 0x372   :  { %2098 = vsyncadd [#allocation4], 4294967168 }
 0x373   :  { %1507 = vsyncpa [#allocation3], 1 }
 0x374   :  { %1508 = vsyncpa [#allocation6], 1 }
 0x375   :  { %1509 = vsyncpa [#allocation9], 1 }
 0x376   :  { %1510 = vsyncpa [#allocation4], 1 }

</bundles_post_ra>
